<compile_context>
chip_gen: v5e
topology: v5e:2x2
jax: 0.10.0
libtpu: 0.0.40
codegen_flags: <defaults>
</compile_context>

<pallas_src>
import functools

import jax
import jax.numpy as jnp
from jax.experimental import pallas as pl
from jax.experimental.pallas import tpu as pltpu


def _round_up(x: int, m: int) -> int:
    return ((x + m - 1) // m) * m


# ----------------------------------------------------------------------------
# Parameter setup (glue, plain JAX): exact personalized PageRank matrix.
#   A_hat = D^{-1/2} (A + I) D^{-1/2}
#   ppr   = alpha * inv(I - (1 - alpha) * A_hat)
# ----------------------------------------------------------------------------
def calc_ppr_exact(adj: jnp.ndarray, alpha: float) -> jnp.ndarray:
    n = adj.shape[0]
    a = adj + jnp.eye(n, dtype=jnp.float32)
    d = jnp.sum(a, axis=1)
    d_inv_sqrt = 1.0 / jnp.sqrt(d)
    a_hat = d_inv_sqrt[:, None] * a * d_inv_sqrt[None, :]
    a_inner = jnp.eye(n, dtype=jnp.float32) - (1.0 - alpha) * a_hat
    return (alpha * jnp.linalg.inv(a_inner)).astype(jnp.float32)


# ----------------------------------------------------------------------------
# Pallas kernel.
#
# Grid = (num_b_tiles, num_k_tiles), both "arbitrary" (sequential):
#   i -> TB-row slab of the output
#   k -> TK-column slab of the contraction over N
#
# At k == 0 the TB indexed rows of `mat` are gathered from HBM with one
# full-row DMA each into slot (i % 2) of a (2*TB, Npad) VMEM slab, and the
# NEXT tile's rows are prefetched into the other slot.  Every k step does
#   out_tile += gathered[:, k*TK:(k+1)*TK] @ predictions_tile
# into the VMEM-resident f32 output block.
# ----------------------------------------------------------------------------
def _ppr_kernel(idx_ref, mat_hbm, pred_ref, out_ref, gath_ref, sem, *, tb, tk):
    i = pl.program_id(0)           # B tile
    k = pl.program_id(1)           # contraction tile
    num_b = pl.num_programs(0)
    slot = i % 2                   # ping-pong slot of the gather double buffer

    def start_gather(tile, slot_):
        # Issue tb full-row DMAs (HBM -> VMEM), all outstanding on one sem.
        base = tile * tb
        dst0 = slot_ * tb

        def body(r, carry):
            src_row = idx_ref[base + r]
            pltpu.make_async_copy(
                mat_hbm.at[pl.ds(src_row, 1), :],
                gath_ref.at[pl.ds(dst0 + r, 1), :],
                sem.at[slot_],
            ).start()
            return carry

        jax.lax.fori_loop(0, tb, body, 0, unroll=8)

    def wait_gather(slot_):
        # All row copies of this slot share sem[slot_] and are the same size,
        # so tb equal-sized waits account for all of them.
        dst0 = slot_ * tb

        def body(r, carry):
            pltpu.make_async_copy(
                mat_hbm.at[pl.ds(0, 1), :],           # shape/size only
                gath_ref.at[pl.ds(dst0 + r, 1), :],
                sem.at[slot_],
            ).wait()
            return carry

        jax.lax.fori_loop(0, tb, body, 0, unroll=8)

    @pl.when(k == 0)
    def _():
        # Prime the pipeline for the very first B tile.
        @pl.when(i == 0)
        def _():
            start_gather(0, 0)

        # Rows for the current tile (started above, or prefetched by the
        # previous tile).
        wait_gather(slot)

        # Prefetch the next tile's rows into the other slot; these DMAs
        # overlap this tile's entire contraction loop.
        @pl.when(i + 1 < num_b)
        def _():
            start_gather(i + 1, 1 - slot)

        # Output block is resident across the k axis: init once per B tile.
        out_ref[...] = jnp.zeros_like(out_ref)

    # Hot path: (TB, TK) @ (TK, Cpad) on the MXU, accumulated in f32.
    row0 = pl.multiple_of(slot * tb, 8)
    col0 = pl.multiple_of(k * tk, 128)
    rows = gath_ref[pl.ds(row0, tb), pl.ds(col0, tk)]
    out_ref[...] += jnp.dot(rows, pred_ref[...],
                            preferred_element_type=jnp.float32)


@functools.partial(jax.jit, static_argnames=("mat_dtype", "block_b", "block_k"))
def ppr_exact_forward(mat: jnp.ndarray, predictions: jnp.ndarray,
                      idx: jnp.ndarray, *, mat_dtype=jnp.float32,
                      block_b=None, block_k=None) -> jnp.ndarray:
    """out = mat[idx] @ predictions (identity dropout)."""
    n = mat.shape[0]
    c = predictions.shape[1]
    b = idx.shape[0]

    # Clamp indices: manual HBM DMAs have no runtime bounds check.
    idx = jnp.clip(idx.astype(jnp.int32), 0, n - 1)

    # ---------------- static tiling decisions ----------------
    lane = 128
    elt = jnp.dtype(mat_dtype).itemsize
    c_pad = _round_up(c, lane)                       # lane-dense pred/out

    # Contraction tile: a multiple of 128 dividing the padded N, capped ~2048.
    if block_k is not None:
        tk = _round_up(block_k, lane)
        n_pad = _round_up(n, tk)
    else:
        n_pad = _round_up(n, lane)
        tk = lane
        for m in range(min(n_pad, 2048) // lane, 0, -1):
            if n_pad % (m * lane) == 0:
                tk = m * lane
                break
    num_k = n_pad // tk

    # B tile: fill the MXU when possible; cap the double-buffered gather slab
    # (2 * tb * n_pad * elt bytes) at ~16 MiB so it fits v7x's 64 MiB VMEM.
    if block_b is not None:
        tb = max(8, _round_up(block_b, 8))
    elif b >= 256:
        tb = 256
    elif b >= 128:
        tb = 128
    else:
        tb = _round_up(b, 8)
    tb_cap = max(8, ((16 * 1024 * 1024) // (2 * n_pad * elt)) // 8 * 8)
    tb = min(tb, tb_cap)
    b_pad = _round_up(b, tb)
    num_b = b_pad // tb

    # ---------------- padded operands (layout plumbing) ----------------
    mat_p = jnp.pad(mat.astype(mat_dtype), ((0, 0), (0, n_pad - n)))
    pred_p = jnp.pad(predictions.astype(mat_dtype),
                     ((0, n_pad - n), (0, c_pad - c)))
    idx_p = jnp.pad(idx, (0, b_pad - b))

    # VMEM budget: gather double buffer + pipelined pred tiles + out block.
    vmem_bytes = (2 * tb * n_pad * elt
                  + 2 * tk * c_pad * elt
                  + 2 * tb * c_pad * 4)
    vmem_limit = int(min(max(2 * vmem_bytes, 32 << 20), 64 << 20))

    grid_spec = pltpu.PrefetchScalarGridSpec(
        num_scalar_prefetch=1,              # idx lands in SMEM before the grid
        grid=(num_b, num_k),
        in_specs=[
            pl.BlockSpec(memory_space=pl.ANY),                        # mat: HBM
            pl.BlockSpec((tk, c_pad), lambda i, k, idx_ref: (k, 0)),  # pred
        ],
        out_specs=pl.BlockSpec((tb, c_pad), lambda i, k, idx_ref: (i, 0)),
        scratch_shapes=[
            pltpu.VMEM((2 * tb, n_pad), mat_dtype),   # gathered rows, 2 slots
            pltpu.SemaphoreType.DMA((2,)),            # one sem per slot
        ],
    )

    cost = pl.CostEstimate(
        flops=2 * b_pad * n_pad * c_pad,
        transcendentals=0,
        bytes_accessed=(b_pad * n_pad * elt       # gathered rows of mat
                        + n_pad * c_pad * elt     # predictions
                        + b_pad * c_pad * 4),     # output
    )

    out = pl.pallas_call(
        functools.partial(_ppr_kernel, tb=tb, tk=tk),
        out_shape=jax.ShapeDtypeStruct((b_pad, c_pad), jnp.float32),
        grid_spec=grid_spec,
        compiler_params=pltpu.CompilerParams(
            dimension_semantics=("arbitrary", "arbitrary"),
            vmem_limit_bytes=vmem_limit,
        ),
        cost_estimate=cost,
    )(idx_p, mat_p, pred_p)

    return out[:b, :c]


if __name__ == "__main__":
    key = jax.random.PRNGKey(0)
    k_adj, k_pred, k_idx, k_adj2, k_pred2, k_idx2 = jax.random.split(key, 6)

    def make_inputs(k_a, k_p, k_i, n, c, b, alpha=0.1):
        rand = jax.random.uniform(k_a, (n, n))
        adj = (rand < 0.05).astype(jnp.float32)
        adj = jnp.maximum(adj, adj.T)
        adj = adj * (1.0 - jnp.eye(n, dtype=jnp.float32))
        mat = calc_ppr_exact(adj, alpha)                     # (N, N) buffer
        pred = jax.random.normal(k_p, (n, c), dtype=jnp.float32)
        idx = jax.random.randint(k_i, (b,), 0, n, dtype=jnp.int32)
        return mat, pred, idx

    # Test 1: small default config (single B tile, single contraction tile).
    N, C, B = 128, 16, 8
    mat, predictions, idx = make_inputs(k_adj, k_pred, k_idx, N, C, B)
    out = jax.block_until_ready(ppr_exact_forward(mat, predictions, idx))
    ref = mat[idx] @ predictions
    assert out.shape == (B, C)
    assert jnp.allclose(out, ref, atol=1e-4, rtol=1e-4), (
        f"max abs err {jnp.max(jnp.abs(out - ref))}")

    # Test 2: forced small tiles so the multi-tile paths are exercised
    # (3 B tiles -> gather prefetch ping-pong, 3 K tiles -> accumulation).
    N2, C2, B2 = 384, 16, 24
    mat2, pred2, idx2 = make_inputs(k_adj2, k_pred2, k_idx2, N2, C2, B2)
    out2 = jax.block_until_ready(
        ppr_exact_forward(mat2, pred2, idx2, block_b=8, block_k=128))
    ref2 = mat2[idx2] @ pred2
    assert out2.shape == (B2, C2)
    assert jnp.allclose(out2, ref2, atol=1e-4, rtol=1e-4), (
        f"max abs err {jnp.max(jnp.abs(out2 - ref2))}")

    print("KERNEL_OK")
</pallas_src>

<mosaic_0001>
module attributes {stable_mosaic.version = 11 : i64} {
  func.func @_ppr_kernel(%arg0: i32, %arg1: i32, %arg2: memref<8xi32, #tpu.memory_space<smem>>, %arg3: memref<128x128xf32, #tpu.memory_space<any>>, %arg4: memref<128x128xf32, #tpu.memory_space<vmem>>, %arg5: memref<8x128xf32, #tpu.memory_space<vmem>>, %arg6: memref<16x128xf32, #tpu.memory_space<vmem>>, %arg7: memref<2x!tpu.dma_semaphore, #tpu.memory_space<semaphore_mem>>) attributes {dimension_semantics = [#tpu.dimension_semantics<arbitrary>, #tpu.dimension_semantics<arbitrary>], iteration_bounds = array<i64: 1, 1>, scalar_prefetch = 1 : i64, scratch_operands = 2 : i64, tpu.core_type = #tpu.core_type<tc>, window_params = [{}, {transform_indices = @transform_1, window_bounds = array<i64: 128, 128>}, {transform_indices = @transform_2, window_bounds = array<i64: 8, 128>}]} {
    %c2_i32 = arith.constant 2 : i32
    %c0_i32 = arith.constant 0 : i32
    %0 = arith.cmpi eq, %c2_i32, %c0_i32 : i32
    %c1_i32 = arith.constant 1 : i32
    %1 = arith.select %0, %c1_i32, %c2_i32 : i32
    %2 = arith.remsi %arg0, %1 : i32
    %c0_i32_0 = arith.constant 0 : i32
    %3 = arith.cmpi ne, %2, %c0_i32_0 : i32
    %c0_i32_1 = arith.constant 0 : i32
    %4 = arith.cmpi slt, %2, %c0_i32_1 : i32
    %c0_i32_2 = arith.constant 0 : i32
    %5 = arith.cmpi slt, %1, %c0_i32_2 : i32
    %6 = arith.xori %4, %5 : i1
    %7 = arith.andi %6, %3 : i1
    %8 = arith.addi %2, %1 : i32
    %9 = arith.select %7, %8, %2 : i32
    %c0_i32_3 = arith.constant 0 : i32
    %10 = arith.cmpi eq, %arg1, %c0_i32_3 : i32
    %11 = arith.extui %10 : i1 to i32
    %c0_i32_4 = arith.constant 0 : i32
    %12 = arith.cmpi ne, %11, %c0_i32_4 : i32
    scf.if %12 {
      %c0_i32_10 = arith.constant 0 : i32
      %25 = arith.cmpi eq, %arg0, %c0_i32_10 : i32
      %26 = arith.extui %25 : i1 to i32
      %c0_i32_11 = arith.constant 0 : i32
      %27 = arith.cmpi ne, %26, %c0_i32_11 : i32
      scf.if %27 {
        %c0_i32_47 = arith.constant 0 : i32
        %c0_i32_48 = arith.constant 0 : i32
        %75 = arith.addi %c0_i32_48, %c0_i32_47 : i32
        %76 = arith.index_cast %75 : i32 to index
        %77 = memref.load %arg2[%76] : memref<8xi32, #tpu.memory_space<smem>>
        %c0_i32_49 = arith.constant 0 : i32
        %78 = arith.addi %c0_i32_49, %c0_i32_47 : i32
        %c0_i32_50 = arith.constant 0 : i32
        %c0_i32_51 = arith.constant 0 : i32
        %79 = tpu.memref_slice %arg3[%77, %c0_i32_51] : memref<128x128xf32, #tpu.memory_space<any>> -> memref<1x128xf32, #tpu.memory_space<any>>
        %c0_i32_52 = arith.constant 0 : i32
        %80 = tpu.memref_slice %arg6[%78, %c0_i32_52] : memref<16x128xf32, #tpu.memory_space<vmem>> -> memref<1x128xf32, #tpu.memory_space<vmem>>
        %81 = tpu.memref_slice %arg7[%c0_i32_50] : memref<2x!tpu.dma_semaphore, #tpu.memory_space<semaphore_mem>> -> memref<1x!tpu.dma_semaphore, #tpu.memory_space<semaphore_mem>>
        %82 = tpu.memref_squeeze %81 : memref<1x!tpu.dma_semaphore, #tpu.memory_space<semaphore_mem>> -> memref<!tpu.dma_semaphore, #tpu.memory_space<semaphore_mem>>
        tpu.enqueue_dma source(%79 : memref<1x128xf32, #tpu.memory_space<any>>) target(%80 : memref<1x128xf32, #tpu.memory_space<vmem>>) target_semaphore(%82 : memref<!tpu.dma_semaphore, #tpu.memory_space<semaphore_mem>>)
        %c1_i32_53 = arith.constant 1 : i32
        %c0_i32_54 = arith.constant 0 : i32
        %83 = arith.addi %c0_i32_54, %c1_i32_53 : i32
        %84 = arith.index_cast %83 : i32 to index
        %85 = memref.load %arg2[%84] : memref<8xi32, #tpu.memory_space<smem>>
        %c0_i32_55 = arith.constant 0 : i32
        %86 = arith.addi %c0_i32_55, %c1_i32_53 : i32
        %c0_i32_56 = arith.constant 0 : i32
        %c0_i32_57 = arith.constant 0 : i32
        %87 = tpu.memref_slice %arg3[%85, %c0_i32_57] : memref<128x128xf32, #tpu.memory_space<any>> -> memref<1x128xf32, #tpu.memory_space<any>>
        %c0_i32_58 = arith.constant 0 : i32
        %88 = tpu.memref_slice %arg6[%86, %c0_i32_58] : memref<16x128xf32, #tpu.memory_space<vmem>> -> memref<1x128xf32, #tpu.memory_space<vmem>>
        %89 = tpu.memref_slice %arg7[%c0_i32_56] : memref<2x!tpu.dma_semaphore, #tpu.memory_space<semaphore_mem>> -> memref<1x!tpu.dma_semaphore, #tpu.memory_space<semaphore_mem>>
        %90 = tpu.memref_squeeze %89 : memref<1x!tpu.dma_semaphore, #tpu.memory_space<semaphore_mem>> -> memref<!tpu.dma_semaphore, #tpu.memory_space<semaphore_mem>>
        tpu.enqueue_dma source(%87 : memref<1x128xf32, #tpu.memory_space<any>>) target(%88 : memref<1x128xf32, #tpu.memory_space<vmem>>) target_semaphore(%90 : memref<!tpu.dma_semaphore, #tpu.memory_space<semaphore_mem>>)
        %c2_i32_59 = arith.constant 2 : i32
        %c0_i32_60 = arith.constant 0 : i32
        %91 = arith.addi %c0_i32_60, %c2_i32_59 : i32
        %92 = arith.index_cast %91 : i32 to index
        %93 = memref.load %arg2[%92] : memref<8xi32, #tpu.memory_space<smem>>
        %c0_i32_61 = arith.constant 0 : i32
        %94 = arith.addi %c0_i32_61, %c2_i32_59 : i32
        %c0_i32_62 = arith.constant 0 : i32
        %c0_i32_63 = arith.constant 0 : i32
        %95 = tpu.memref_slice %arg3[%93, %c0_i32_63] : memref<128x128xf32, #tpu.memory_space<any>> -> memref<1x128xf32, #tpu.memory_space<any>>
        %c0_i32_64 = arith.constant 0 : i32
        %96 = tpu.memref_slice %arg6[%94, %c0_i32_64] : memref<16x128xf32, #tpu.memory_space<vmem>> -> memref<1x128xf32, #tpu.memory_space<vmem>>
        %97 = tpu.memref_slice %arg7[%c0_i32_62] : memref<2x!tpu.dma_semaphore, #tpu.memory_space<semaphore_mem>> -> memref<1x!tpu.dma_semaphore, #tpu.memory_space<semaphore_mem>>
        %98 = tpu.memref_squeeze %97 : memref<1x!tpu.dma_semaphore, #tpu.memory_space<semaphore_mem>> -> memref<!tpu.dma_semaphore, #tpu.memory_space<semaphore_mem>>
        tpu.enqueue_dma source(%95 : memref<1x128xf32, #tpu.memory_space<any>>) target(%96 : memref<1x128xf32, #tpu.memory_space<vmem>>) target_semaphore(%98 : memref<!tpu.dma_semaphore, #tpu.memory_space<semaphore_mem>>)
        %c3_i32_65 = arith.constant 3 : i32
        %c0_i32_66 = arith.constant 0 : i32
        %99 = arith.addi %c0_i32_66, %c3_i32_65 : i32
        %100 = arith.index_cast %99 : i32 to index
        %101 = memref.load %arg2[%100] : memref<8xi32, #tpu.memory_space<smem>>
        %c0_i32_67 = arith.constant 0 : i32
        %102 = arith.addi %c0_i32_67, %c3_i32_65 : i32
        %c0_i32_68 = arith.constant 0 : i32
        %c0_i32_69 = arith.constant 0 : i32
        %103 = tpu.memref_slice %arg3[%101, %c0_i32_69] : memref<128x128xf32, #tpu.memory_space<any>> -> memref<1x128xf32, #tpu.memory_space<any>>
        %c0_i32_70 = arith.constant 0 : i32
        %104 = tpu.memref_slice %arg6[%102, %c0_i32_70] : memref<16x128xf32, #tpu.memory_space<vmem>> -> memref<1x128xf32, #tpu.memory_space<vmem>>
        %105 = tpu.memref_slice %arg7[%c0_i32_68] : memref<2x!tpu.dma_semaphore, #tpu.memory_space<semaphore_mem>> -> memref<1x!tpu.dma_semaphore, #tpu.memory_space<semaphore_mem>>
        %106 = tpu.memref_squeeze %105 : memref<1x!tpu.dma_semaphore, #tpu.memory_space<semaphore_mem>> -> memref<!tpu.dma_semaphore, #tpu.memory_space<semaphore_mem>>
        tpu.enqueue_dma source(%103 : memref<1x128xf32, #tpu.memory_space<any>>) target(%104 : memref<1x128xf32, #tpu.memory_space<vmem>>) target_semaphore(%106 : memref<!tpu.dma_semaphore, #tpu.memory_space<semaphore_mem>>)
        %c4_i32_71 = arith.constant 4 : i32
        %c0_i32_72 = arith.constant 0 : i32
        %107 = arith.addi %c0_i32_72, %c4_i32_71 : i32
        %108 = arith.index_cast %107 : i32 to index
        %109 = memref.load %arg2[%108] : memref<8xi32, #tpu.memory_space<smem>>
        %c0_i32_73 = arith.constant 0 : i32
        %110 = arith.addi %c0_i32_73, %c4_i32_71 : i32
        %c0_i32_74 = arith.constant 0 : i32
        %c0_i32_75 = arith.constant 0 : i32
        %111 = tpu.memref_slice %arg3[%109, %c0_i32_75] : memref<128x128xf32, #tpu.memory_space<any>> -> memref<1x128xf32, #tpu.memory_space<any>>
        %c0_i32_76 = arith.constant 0 : i32
        %112 = tpu.memref_slice %arg6[%110, %c0_i32_76] : memref<16x128xf32, #tpu.memory_space<vmem>> -> memref<1x128xf32, #tpu.memory_space<vmem>>
        %113 = tpu.memref_slice %arg7[%c0_i32_74] : memref<2x!tpu.dma_semaphore, #tpu.memory_space<semaphore_mem>> -> memref<1x!tpu.dma_semaphore, #tpu.memory_space<semaphore_mem>>
        %114 = tpu.memref_squeeze %113 : memref<1x!tpu.dma_semaphore, #tpu.memory_space<semaphore_mem>> -> memref<!tpu.dma_semaphore, #tpu.memory_space<semaphore_mem>>
        tpu.enqueue_dma source(%111 : memref<1x128xf32, #tpu.memory_space<any>>) target(%112 : memref<1x128xf32, #tpu.memory_space<vmem>>) target_semaphore(%114 : memref<!tpu.dma_semaphore, #tpu.memory_space<semaphore_mem>>)
        %c5_i32_77 = arith.constant 5 : i32
        %c0_i32_78 = arith.constant 0 : i32
        %115 = arith.addi %c0_i32_78, %c5_i32_77 : i32
        %116 = arith.index_cast %115 : i32 to index
        %117 = memref.load %arg2[%116] : memref<8xi32, #tpu.memory_space<smem>>
        %c0_i32_79 = arith.constant 0 : i32
        %118 = arith.addi %c0_i32_79, %c5_i32_77 : i32
        %c0_i32_80 = arith.constant 0 : i32
        %c0_i32_81 = arith.constant 0 : i32
        %119 = tpu.memref_slice %arg3[%117, %c0_i32_81] : memref<128x128xf32, #tpu.memory_space<any>> -> memref<1x128xf32, #tpu.memory_space<any>>
        %c0_i32_82 = arith.constant 0 : i32
        %120 = tpu.memref_slice %arg6[%118, %c0_i32_82] : memref<16x128xf32, #tpu.memory_space<vmem>> -> memref<1x128xf32, #tpu.memory_space<vmem>>
        %121 = tpu.memref_slice %arg7[%c0_i32_80] : memref<2x!tpu.dma_semaphore, #tpu.memory_space<semaphore_mem>> -> memref<1x!tpu.dma_semaphore, #tpu.memory_space<semaphore_mem>>
        %122 = tpu.memref_squeeze %121 : memref<1x!tpu.dma_semaphore, #tpu.memory_space<semaphore_mem>> -> memref<!tpu.dma_semaphore, #tpu.memory_space<semaphore_mem>>
        tpu.enqueue_dma source(%119 : memref<1x128xf32, #tpu.memory_space<any>>) target(%120 : memref<1x128xf32, #tpu.memory_space<vmem>>) target_semaphore(%122 : memref<!tpu.dma_semaphore, #tpu.memory_space<semaphore_mem>>)
        %c6_i32_83 = arith.constant 6 : i32
        %c0_i32_84 = arith.constant 0 : i32
        %123 = arith.addi %c0_i32_84, %c6_i32_83 : i32
        %124 = arith.index_cast %123 : i32 to index
        %125 = memref.load %arg2[%124] : memref<8xi32, #tpu.memory_space<smem>>
        %c0_i32_85 = arith.constant 0 : i32
        %126 = arith.addi %c0_i32_85, %c6_i32_83 : i32
        %c0_i32_86 = arith.constant 0 : i32
        %c0_i32_87 = arith.constant 0 : i32
        %127 = tpu.memref_slice %arg3[%125, %c0_i32_87] : memref<128x128xf32, #tpu.memory_space<any>> -> memref<1x128xf32, #tpu.memory_space<any>>
        %c0_i32_88 = arith.constant 0 : i32
        %128 = tpu.memref_slice %arg6[%126, %c0_i32_88] : memref<16x128xf32, #tpu.memory_space<vmem>> -> memref<1x128xf32, #tpu.memory_space<vmem>>
        %129 = tpu.memref_slice %arg7[%c0_i32_86] : memref<2x!tpu.dma_semaphore, #tpu.memory_space<semaphore_mem>> -> memref<1x!tpu.dma_semaphore, #tpu.memory_space<semaphore_mem>>
        %130 = tpu.memref_squeeze %129 : memref<1x!tpu.dma_semaphore, #tpu.memory_space<semaphore_mem>> -> memref<!tpu.dma_semaphore, #tpu.memory_space<semaphore_mem>>
        tpu.enqueue_dma source(%127 : memref<1x128xf32, #tpu.memory_space<any>>) target(%128 : memref<1x128xf32, #tpu.memory_space<vmem>>) target_semaphore(%130 : memref<!tpu.dma_semaphore, #tpu.memory_space<semaphore_mem>>)
        %c7_i32_89 = arith.constant 7 : i32
        %c0_i32_90 = arith.constant 0 : i32
        %131 = arith.addi %c0_i32_90, %c7_i32_89 : i32
        %132 = arith.index_cast %131 : i32 to index
        %133 = memref.load %arg2[%132] : memref<8xi32, #tpu.memory_space<smem>>
        %c0_i32_91 = arith.constant 0 : i32
        %134 = arith.addi %c0_i32_91, %c7_i32_89 : i32
        %c0_i32_92 = arith.constant 0 : i32
        %c0_i32_93 = arith.constant 0 : i32
        %135 = tpu.memref_slice %arg3[%133, %c0_i32_93] : memref<128x128xf32, #tpu.memory_space<any>> -> memref<1x128xf32, #tpu.memory_space<any>>
        %c0_i32_94 = arith.constant 0 : i32
        %136 = tpu.memref_slice %arg6[%134, %c0_i32_94] : memref<16x128xf32, #tpu.memory_space<vmem>> -> memref<1x128xf32, #tpu.memory_space<vmem>>
        %137 = tpu.memref_slice %arg7[%c0_i32_92] : memref<2x!tpu.dma_semaphore, #tpu.memory_space<semaphore_mem>> -> memref<1x!tpu.dma_semaphore, #tpu.memory_space<semaphore_mem>>
        %138 = tpu.memref_squeeze %137 : memref<1x!tpu.dma_semaphore, #tpu.memory_space<semaphore_mem>> -> memref<!tpu.dma_semaphore, #tpu.memory_space<semaphore_mem>>
        tpu.enqueue_dma source(%135 : memref<1x128xf32, #tpu.memory_space<any>>) target(%136 : memref<1x128xf32, #tpu.memory_space<vmem>>) target_semaphore(%138 : memref<!tpu.dma_semaphore, #tpu.memory_space<semaphore_mem>>)
        %c8_i32_95 = arith.constant 8 : i32
      } else {
      }
      %c8_i32_12 = arith.constant 8 : i32
      %28 = arith.muli %9, %c8_i32_12 : i32
      %c0_i32_13 = arith.constant 0 : i32
      %29 = arith.addi %28, %c0_i32_13 : i32
      %c0_i32_14 = arith.constant 0 : i32
      %c0_i32_15 = arith.constant 0 : i32
      %30 = tpu.memref_slice %arg3[%c0_i32_14, %c0_i32_15] : memref<128x128xf32, #tpu.memory_space<any>> -> memref<1x128xf32, #tpu.memory_space<any>>
      %c0_i32_16 = arith.constant 0 : i32
      %31 = tpu.memref_slice %arg6[%29, %c0_i32_16] : memref<16x128xf32, #tpu.memory_space<vmem>> -> memref<1x128xf32, #tpu.memory_space<vmem>>
      %32 = tpu.memref_slice %arg7[%9] : memref<2x!tpu.dma_semaphore, #tpu.memory_space<semaphore_mem>> -> memref<1x!tpu.dma_semaphore, #tpu.memory_space<semaphore_mem>>
      %33 = tpu.memref_squeeze %32 : memref<1x!tpu.dma_semaphore, #tpu.memory_space<semaphore_mem>> -> memref<!tpu.dma_semaphore, #tpu.memory_space<semaphore_mem>>
      tpu.wait_dma2 semaphore(%33 : memref<!tpu.dma_semaphore, #tpu.memory_space<semaphore_mem>>) src(%30 : memref<1x128xf32, #tpu.memory_space<any>>) dst(%31 : memref<1x128xf32, #tpu.memory_space<vmem>>)
      %c1_i32_17 = arith.constant 1 : i32
      %34 = arith.addi %28, %c1_i32_17 : i32
      %c0_i32_18 = arith.constant 0 : i32
      %c0_i32_19 = arith.constant 0 : i32
      %35 = tpu.memref_slice %arg3[%c0_i32_18, %c0_i32_19] : memref<128x128xf32, #tpu.memory_space<any>> -> memref<1x128xf32, #tpu.memory_space<any>>
      %c0_i32_20 = arith.constant 0 : i32
      %36 = tpu.memref_slice %arg6[%34, %c0_i32_20] : memref<16x128xf32, #tpu.memory_space<vmem>> -> memref<1x128xf32, #tpu.memory_space<vmem>>
      %37 = tpu.memref_slice %arg7[%9] : memref<2x!tpu.dma_semaphore, #tpu.memory_space<semaphore_mem>> -> memref<1x!tpu.dma_semaphore, #tpu.memory_space<semaphore_mem>>
      %38 = tpu.memref_squeeze %37 : memref<1x!tpu.dma_semaphore, #tpu.memory_space<semaphore_mem>> -> memref<!tpu.dma_semaphore, #tpu.memory_space<semaphore_mem>>
      tpu.wait_dma2 semaphore(%38 : memref<!tpu.dma_semaphore, #tpu.memory_space<semaphore_mem>>) src(%35 : memref<1x128xf32, #tpu.memory_space<any>>) dst(%36 : memref<1x128xf32, #tpu.memory_space<vmem>>)
      %c2_i32_21 = arith.constant 2 : i32
      %39 = arith.addi %28, %c2_i32_21 : i32
      %c0_i32_22 = arith.constant 0 : i32
      %c0_i32_23 = arith.constant 0 : i32
      %40 = tpu.memref_slice %arg3[%c0_i32_22, %c0_i32_23] : memref<128x128xf32, #tpu.memory_space<any>> -> memref<1x128xf32, #tpu.memory_space<any>>
      %c0_i32_24 = arith.constant 0 : i32
      %41 = tpu.memref_slice %arg6[%39, %c0_i32_24] : memref<16x128xf32, #tpu.memory_space<vmem>> -> memref<1x128xf32, #tpu.memory_space<vmem>>
      %42 = tpu.memref_slice %arg7[%9] : memref<2x!tpu.dma_semaphore, #tpu.memory_space<semaphore_mem>> -> memref<1x!tpu.dma_semaphore, #tpu.memory_space<semaphore_mem>>
      %43 = tpu.memref_squeeze %42 : memref<1x!tpu.dma_semaphore, #tpu.memory_space<semaphore_mem>> -> memref<!tpu.dma_semaphore, #tpu.memory_space<semaphore_mem>>
      tpu.wait_dma2 semaphore(%43 : memref<!tpu.dma_semaphore, #tpu.memory_space<semaphore_mem>>) src(%40 : memref<1x128xf32, #tpu.memory_space<any>>) dst(%41 : memref<1x128xf32, #tpu.memory_space<vmem>>)
      %c3_i32 = arith.constant 3 : i32
      %44 = arith.addi %28, %c3_i32 : i32
      %c0_i32_25 = arith.constant 0 : i32
      %c0_i32_26 = arith.constant 0 : i32
      %45 = tpu.memref_slice %arg3[%c0_i32_25, %c0_i32_26] : memref<128x128xf32, #tpu.memory_space<any>> -> memref<1x128xf32, #tpu.memory_space<any>>
      %c0_i32_27 = arith.constant 0 : i32
      %46 = tpu.memref_slice %arg6[%44, %c0_i32_27] : memref<16x128xf32, #tpu.memory_space<vmem>> -> memref<1x128xf32, #tpu.memory_space<vmem>>
      %47 = tpu.memref_slice %arg7[%9] : memref<2x!tpu.dma_semaphore, #tpu.memory_space<semaphore_mem>> -> memref<1x!tpu.dma_semaphore, #tpu.memory_space<semaphore_mem>>
      %48 = tpu.memref_squeeze %47 : memref<1x!tpu.dma_semaphore, #tpu.memory_space<semaphore_mem>> -> memref<!tpu.dma_semaphore, #tpu.memory_space<semaphore_mem>>
      tpu.wait_dma2 semaphore(%48 : memref<!tpu.dma_semaphore, #tpu.memory_space<semaphore_mem>>) src(%45 : memref<1x128xf32, #tpu.memory_space<any>>) dst(%46 : memref<1x128xf32, #tpu.memory_space<vmem>>)
      %c4_i32 = arith.constant 4 : i32
      %49 = arith.addi %28, %c4_i32 : i32
      %c0_i32_28 = arith.constant 0 : i32
      %c0_i32_29 = arith.constant 0 : i32
      %50 = tpu.memref_slice %arg3[%c0_i32_28, %c0_i32_29] : memref<128x128xf32, #tpu.memory_space<any>> -> memref<1x128xf32, #tpu.memory_space<any>>
      %c0_i32_30 = arith.constant 0 : i32
      %51 = tpu.memref_slice %arg6[%49, %c0_i32_30] : memref<16x128xf32, #tpu.memory_space<vmem>> -> memref<1x128xf32, #tpu.memory_space<vmem>>
      %52 = tpu.memref_slice %arg7[%9] : memref<2x!tpu.dma_semaphore, #tpu.memory_space<semaphore_mem>> -> memref<1x!tpu.dma_semaphore, #tpu.memory_space<semaphore_mem>>
      %53 = tpu.memref_squeeze %52 : memref<1x!tpu.dma_semaphore, #tpu.memory_space<semaphore_mem>> -> memref<!tpu.dma_semaphore, #tpu.memory_space<semaphore_mem>>
      tpu.wait_dma2 semaphore(%53 : memref<!tpu.dma_semaphore, #tpu.memory_space<semaphore_mem>>) src(%50 : memref<1x128xf32, #tpu.memory_space<any>>) dst(%51 : memref<1x128xf32, #tpu.memory_space<vmem>>)
      %c5_i32 = arith.constant 5 : i32
      %54 = arith.addi %28, %c5_i32 : i32
      %c0_i32_31 = arith.constant 0 : i32
      %c0_i32_32 = arith.constant 0 : i32
      %55 = tpu.memref_slice %arg3[%c0_i32_31, %c0_i32_32] : memref<128x128xf32, #tpu.memory_space<any>> -> memref<1x128xf32, #tpu.memory_space<any>>
      %c0_i32_33 = arith.constant 0 : i32
      %56 = tpu.memref_slice %arg6[%54, %c0_i32_33] : memref<16x128xf32, #tpu.memory_space<vmem>> -> memref<1x128xf32, #tpu.memory_space<vmem>>
      %57 = tpu.memref_slice %arg7[%9] : memref<2x!tpu.dma_semaphore, #tpu.memory_space<semaphore_mem>> -> memref<1x!tpu.dma_semaphore, #tpu.memory_space<semaphore_mem>>
      %58 = tpu.memref_squeeze %57 : memref<1x!tpu.dma_semaphore, #tpu.memory_space<semaphore_mem>> -> memref<!tpu.dma_semaphore, #tpu.memory_space<semaphore_mem>>
      tpu.wait_dma2 semaphore(%58 : memref<!tpu.dma_semaphore, #tpu.memory_space<semaphore_mem>>) src(%55 : memref<1x128xf32, #tpu.memory_space<any>>) dst(%56 : memref<1x128xf32, #tpu.memory_space<vmem>>)
      %c6_i32 = arith.constant 6 : i32
      %59 = arith.addi %28, %c6_i32 : i32
      %c0_i32_34 = arith.constant 0 : i32
      %c0_i32_35 = arith.constant 0 : i32
      %60 = tpu.memref_slice %arg3[%c0_i32_34, %c0_i32_35] : memref<128x128xf32, #tpu.memory_space<any>> -> memref<1x128xf32, #tpu.memory_space<any>>
      %c0_i32_36 = arith.constant 0 : i32
      %61 = tpu.memref_slice %arg6[%59, %c0_i32_36] : memref<16x128xf32, #tpu.memory_space<vmem>> -> memref<1x128xf32, #tpu.memory_space<vmem>>
      %62 = tpu.memref_slice %arg7[%9] : memref<2x!tpu.dma_semaphore, #tpu.memory_space<semaphore_mem>> -> memref<1x!tpu.dma_semaphore, #tpu.memory_space<semaphore_mem>>
      %63 = tpu.memref_squeeze %62 : memref<1x!tpu.dma_semaphore, #tpu.memory_space<semaphore_mem>> -> memref<!tpu.dma_semaphore, #tpu.memory_space<semaphore_mem>>
      tpu.wait_dma2 semaphore(%63 : memref<!tpu.dma_semaphore, #tpu.memory_space<semaphore_mem>>) src(%60 : memref<1x128xf32, #tpu.memory_space<any>>) dst(%61 : memref<1x128xf32, #tpu.memory_space<vmem>>)
      %c7_i32 = arith.constant 7 : i32
      %64 = arith.addi %28, %c7_i32 : i32
      %c0_i32_37 = arith.constant 0 : i32
      %c0_i32_38 = arith.constant 0 : i32
      %65 = tpu.memref_slice %arg3[%c0_i32_37, %c0_i32_38] : memref<128x128xf32, #tpu.memory_space<any>> -> memref<1x128xf32, #tpu.memory_space<any>>
      %c0_i32_39 = arith.constant 0 : i32
      %66 = tpu.memref_slice %arg6[%64, %c0_i32_39] : memref<16x128xf32, #tpu.memory_space<vmem>> -> memref<1x128xf32, #tpu.memory_space<vmem>>
      %67 = tpu.memref_slice %arg7[%9] : memref<2x!tpu.dma_semaphore, #tpu.memory_space<semaphore_mem>> -> memref<1x!tpu.dma_semaphore, #tpu.memory_space<semaphore_mem>>
      %68 = tpu.memref_squeeze %67 : memref<1x!tpu.dma_semaphore, #tpu.memory_space<semaphore_mem>> -> memref<!tpu.dma_semaphore, #tpu.memory_space<semaphore_mem>>
      tpu.wait_dma2 semaphore(%68 : memref<!tpu.dma_semaphore, #tpu.memory_space<semaphore_mem>>) src(%65 : memref<1x128xf32, #tpu.memory_space<any>>) dst(%66 : memref<1x128xf32, #tpu.memory_space<vmem>>)
      %c8_i32_40 = arith.constant 8 : i32
      %c1_i32_41 = arith.constant 1 : i32
      %69 = arith.addi %arg0, %c1_i32_41 : i32
      %c1_i32_42 = arith.constant 1 : i32
      %70 = arith.cmpi slt, %69, %c1_i32_42 : i32
      %71 = arith.extui %70 : i1 to i32
      %c0_i32_43 = arith.constant 0 : i32
      %72 = arith.cmpi ne, %71, %c0_i32_43 : i32
      scf.if %72 {
        %c1_i32_47 = arith.constant 1 : i32
        %75 = arith.addi %arg0, %c1_i32_47 : i32
        %c1_i32_48 = arith.constant 1 : i32
        %76 = arith.subi %c1_i32_48, %9 : i32
        %c8_i32_49 = arith.constant 8 : i32
        %77 = arith.muli %75, %c8_i32_49 : i32
        %c8_i32_50 = arith.constant 8 : i32
        %78 = arith.muli %76, %c8_i32_50 : i32
        %c0_i32_51 = arith.constant 0 : i32
        %79 = arith.addi %77, %c0_i32_51 : i32
        %80 = arith.index_cast %79 : i32 to index
        %81 = memref.load %arg2[%80] : memref<8xi32, #tpu.memory_space<smem>>
        %82 = arith.addi %78, %c0_i32_51 : i32
        %c0_i32_52 = arith.constant 0 : i32
        %83 = tpu.memref_slice %arg3[%81, %c0_i32_52] : memref<128x128xf32, #tpu.memory_space<any>> -> memref<1x128xf32, #tpu.memory_space<any>>
        %c0_i32_53 = arith.constant 0 : i32
        %84 = tpu.memref_slice %arg6[%82, %c0_i32_53] : memref<16x128xf32, #tpu.memory_space<vmem>> -> memref<1x128xf32, #tpu.memory_space<vmem>>
        %85 = tpu.memref_slice %arg7[%76] : memref<2x!tpu.dma_semaphore, #tpu.memory_space<semaphore_mem>> -> memref<1x!tpu.dma_semaphore, #tpu.memory_space<semaphore_mem>>
        %86 = tpu.memref_squeeze %85 : memref<1x!tpu.dma_semaphore, #tpu.memory_space<semaphore_mem>> -> memref<!tpu.dma_semaphore, #tpu.memory_space<semaphore_mem>>
        tpu.enqueue_dma source(%83 : memref<1x128xf32, #tpu.memory_space<any>>) target(%84 : memref<1x128xf32, #tpu.memory_space<vmem>>) target_semaphore(%86 : memref<!tpu.dma_semaphore, #tpu.memory_space<semaphore_mem>>)
        %c1_i32_54 = arith.constant 1 : i32
        %87 = arith.addi %77, %c1_i32_54 : i32
        %88 = arith.index_cast %87 : i32 to index
        %89 = memref.load %arg2[%88] : memref<8xi32, #tpu.memory_space<smem>>
        %90 = arith.addi %78, %c1_i32_54 : i32
        %c0_i32_55 = arith.constant 0 : i32
        %91 = tpu.memref_slice %arg3[%89, %c0_i32_55] : memref<128x128xf32, #tpu.memory_space<any>> -> memref<1x128xf32, #tpu.memory_space<any>>
        %c0_i32_56 = arith.constant 0 : i32
        %92 = tpu.memref_slice %arg6[%90, %c0_i32_56] : memref<16x128xf32, #tpu.memory_space<vmem>> -> memref<1x128xf32, #tpu.memory_space<vmem>>
        %93 = tpu.memref_slice %arg7[%76] : memref<2x!tpu.dma_semaphore, #tpu.memory_space<semaphore_mem>> -> memref<1x!tpu.dma_semaphore, #tpu.memory_space<semaphore_mem>>
        %94 = tpu.memref_squeeze %93 : memref<1x!tpu.dma_semaphore, #tpu.memory_space<semaphore_mem>> -> memref<!tpu.dma_semaphore, #tpu.memory_space<semaphore_mem>>
        tpu.enqueue_dma source(%91 : memref<1x128xf32, #tpu.memory_space<any>>) target(%92 : memref<1x128xf32, #tpu.memory_space<vmem>>) target_semaphore(%94 : memref<!tpu.dma_semaphore, #tpu.memory_space<semaphore_mem>>)
        %c2_i32_57 = arith.constant 2 : i32
        %95 = arith.addi %77, %c2_i32_57 : i32
        %96 = arith.index_cast %95 : i32 to index
        %97 = memref.load %arg2[%96] : memref<8xi32, #tpu.memory_space<smem>>
        %98 = arith.addi %78, %c2_i32_57 : i32
        %c0_i32_58 = arith.constant 0 : i32
        %99 = tpu.memref_slice %arg3[%97, %c0_i32_58] : memref<128x128xf32, #tpu.memory_space<any>> -> memref<1x128xf32, #tpu.memory_space<any>>
        %c0_i32_59 = arith.constant 0 : i32
        %100 = tpu.memref_slice %arg6[%98, %c0_i32_59] : memref<16x128xf32, #tpu.memory_space<vmem>> -> memref<1x128xf32, #tpu.memory_space<vmem>>
        %101 = tpu.memref_slice %arg7[%76] : memref<2x!tpu.dma_semaphore, #tpu.memory_space<semaphore_mem>> -> memref<1x!tpu.dma_semaphore, #tpu.memory_space<semaphore_mem>>
        %102 = tpu.memref_squeeze %101 : memref<1x!tpu.dma_semaphore, #tpu.memory_space<semaphore_mem>> -> memref<!tpu.dma_semaphore, #tpu.memory_space<semaphore_mem>>
        tpu.enqueue_dma source(%99 : memref<1x128xf32, #tpu.memory_space<any>>) target(%100 : memref<1x128xf32, #tpu.memory_space<vmem>>) target_semaphore(%102 : memref<!tpu.dma_semaphore, #tpu.memory_space<semaphore_mem>>)
        %c3_i32_60 = arith.constant 3 : i32
        %103 = arith.addi %77, %c3_i32_60 : i32
        %104 = arith.index_cast %103 : i32 to index
        %105 = memref.load %arg2[%104] : memref<8xi32, #tpu.memory_space<smem>>
        %106 = arith.addi %78, %c3_i32_60 : i32
        %c0_i32_61 = arith.constant 0 : i32
        %107 = tpu.memref_slice %arg3[%105, %c0_i32_61] : memref<128x128xf32, #tpu.memory_space<any>> -> memref<1x128xf32, #tpu.memory_space<any>>
        %c0_i32_62 = arith.constant 0 : i32
        %108 = tpu.memref_slice %arg6[%106, %c0_i32_62] : memref<16x128xf32, #tpu.memory_space<vmem>> -> memref<1x128xf32, #tpu.memory_space<vmem>>
        %109 = tpu.memref_slice %arg7[%76] : memref<2x!tpu.dma_semaphore, #tpu.memory_space<semaphore_mem>> -> memref<1x!tpu.dma_semaphore, #tpu.memory_space<semaphore_mem>>
        %110 = tpu.memref_squeeze %109 : memref<1x!tpu.dma_semaphore, #tpu.memory_space<semaphore_mem>> -> memref<!tpu.dma_semaphore, #tpu.memory_space<semaphore_mem>>
        tpu.enqueue_dma source(%107 : memref<1x128xf32, #tpu.memory_space<any>>) target(%108 : memref<1x128xf32, #tpu.memory_space<vmem>>) target_semaphore(%110 : memref<!tpu.dma_semaphore, #tpu.memory_space<semaphore_mem>>)
        %c4_i32_63 = arith.constant 4 : i32
        %111 = arith.addi %77, %c4_i32_63 : i32
        %112 = arith.index_cast %111 : i32 to index
        %113 = memref.load %arg2[%112] : memref<8xi32, #tpu.memory_space<smem>>
        %114 = arith.addi %78, %c4_i32_63 : i32
        %c0_i32_64 = arith.constant 0 : i32
        %115 = tpu.memref_slice %arg3[%113, %c0_i32_64] : memref<128x128xf32, #tpu.memory_space<any>> -> memref<1x128xf32, #tpu.memory_space<any>>
        %c0_i32_65 = arith.constant 0 : i32
        %116 = tpu.memref_slice %arg6[%114, %c0_i32_65] : memref<16x128xf32, #tpu.memory_space<vmem>> -> memref<1x128xf32, #tpu.memory_space<vmem>>
        %117 = tpu.memref_slice %arg7[%76] : memref<2x!tpu.dma_semaphore, #tpu.memory_space<semaphore_mem>> -> memref<1x!tpu.dma_semaphore, #tpu.memory_space<semaphore_mem>>
        %118 = tpu.memref_squeeze %117 : memref<1x!tpu.dma_semaphore, #tpu.memory_space<semaphore_mem>> -> memref<!tpu.dma_semaphore, #tpu.memory_space<semaphore_mem>>
        tpu.enqueue_dma source(%115 : memref<1x128xf32, #tpu.memory_space<any>>) target(%116 : memref<1x128xf32, #tpu.memory_space<vmem>>) target_semaphore(%118 : memref<!tpu.dma_semaphore, #tpu.memory_space<semaphore_mem>>)
        %c5_i32_66 = arith.constant 5 : i32
        %119 = arith.addi %77, %c5_i32_66 : i32
        %120 = arith.index_cast %119 : i32 to index
        %121 = memref.load %arg2[%120] : memref<8xi32, #tpu.memory_space<smem>>
        %122 = arith.addi %78, %c5_i32_66 : i32
        %c0_i32_67 = arith.constant 0 : i32
        %123 = tpu.memref_slice %arg3[%121, %c0_i32_67] : memref<128x128xf32, #tpu.memory_space<any>> -> memref<1x128xf32, #tpu.memory_space<any>>
        %c0_i32_68 = arith.constant 0 : i32
        %124 = tpu.memref_slice %arg6[%122, %c0_i32_68] : memref<16x128xf32, #tpu.memory_space<vmem>> -> memref<1x128xf32, #tpu.memory_space<vmem>>
        %125 = tpu.memref_slice %arg7[%76] : memref<2x!tpu.dma_semaphore, #tpu.memory_space<semaphore_mem>> -> memref<1x!tpu.dma_semaphore, #tpu.memory_space<semaphore_mem>>
        %126 = tpu.memref_squeeze %125 : memref<1x!tpu.dma_semaphore, #tpu.memory_space<semaphore_mem>> -> memref<!tpu.dma_semaphore, #tpu.memory_space<semaphore_mem>>
        tpu.enqueue_dma source(%123 : memref<1x128xf32, #tpu.memory_space<any>>) target(%124 : memref<1x128xf32, #tpu.memory_space<vmem>>) target_semaphore(%126 : memref<!tpu.dma_semaphore, #tpu.memory_space<semaphore_mem>>)
        %c6_i32_69 = arith.constant 6 : i32
        %127 = arith.addi %77, %c6_i32_69 : i32
        %128 = arith.index_cast %127 : i32 to index
        %129 = memref.load %arg2[%128] : memref<8xi32, #tpu.memory_space<smem>>
        %130 = arith.addi %78, %c6_i32_69 : i32
        %c0_i32_70 = arith.constant 0 : i32
        %131 = tpu.memref_slice %arg3[%129, %c0_i32_70] : memref<128x128xf32, #tpu.memory_space<any>> -> memref<1x128xf32, #tpu.memory_space<any>>
        %c0_i32_71 = arith.constant 0 : i32
        %132 = tpu.memref_slice %arg6[%130, %c0_i32_71] : memref<16x128xf32, #tpu.memory_space<vmem>> -> memref<1x128xf32, #tpu.memory_space<vmem>>
        %133 = tpu.memref_slice %arg7[%76] : memref<2x!tpu.dma_semaphore, #tpu.memory_space<semaphore_mem>> -> memref<1x!tpu.dma_semaphore, #tpu.memory_space<semaphore_mem>>
        %134 = tpu.memref_squeeze %133 : memref<1x!tpu.dma_semaphore, #tpu.memory_space<semaphore_mem>> -> memref<!tpu.dma_semaphore, #tpu.memory_space<semaphore_mem>>
        tpu.enqueue_dma source(%131 : memref<1x128xf32, #tpu.memory_space<any>>) target(%132 : memref<1x128xf32, #tpu.memory_space<vmem>>) target_semaphore(%134 : memref<!tpu.dma_semaphore, #tpu.memory_space<semaphore_mem>>)
        %c7_i32_72 = arith.constant 7 : i32
        %135 = arith.addi %77, %c7_i32_72 : i32
        %136 = arith.index_cast %135 : i32 to index
        %137 = memref.load %arg2[%136] : memref<8xi32, #tpu.memory_space<smem>>
        %138 = arith.addi %78, %c7_i32_72 : i32
        %c0_i32_73 = arith.constant 0 : i32
        %139 = tpu.memref_slice %arg3[%137, %c0_i32_73] : memref<128x128xf32, #tpu.memory_space<any>> -> memref<1x128xf32, #tpu.memory_space<any>>
        %c0_i32_74 = arith.constant 0 : i32
        %140 = tpu.memref_slice %arg6[%138, %c0_i32_74] : memref<16x128xf32, #tpu.memory_space<vmem>> -> memref<1x128xf32, #tpu.memory_space<vmem>>
        %141 = tpu.memref_slice %arg7[%76] : memref<2x!tpu.dma_semaphore, #tpu.memory_space<semaphore_mem>> -> memref<1x!tpu.dma_semaphore, #tpu.memory_space<semaphore_mem>>
        %142 = tpu.memref_squeeze %141 : memref<1x!tpu.dma_semaphore, #tpu.memory_space<semaphore_mem>> -> memref<!tpu.dma_semaphore, #tpu.memory_space<semaphore_mem>>
        tpu.enqueue_dma source(%139 : memref<1x128xf32, #tpu.memory_space<any>>) target(%140 : memref<1x128xf32, #tpu.memory_space<vmem>>) target_semaphore(%142 : memref<!tpu.dma_semaphore, #tpu.memory_space<semaphore_mem>>)
        %c8_i32_75 = arith.constant 8 : i32
      } else {
      }
      %cst_44 = arith.constant 0.000000e+00 : f32
      %73 = vector.broadcast %cst_44 : f32 to vector<8x128xf32>
      %c0_45 = arith.constant 0 : index
      %c0_46 = arith.constant 0 : index
      %74 = vector.load %arg5[%c0_45, %c0_46] : memref<8x128xf32, #tpu.memory_space<vmem>>, vector<8x128xf32>
      tpu.vector_store %arg5[%c0_45, %c0_46], %73 {strides = array<i32>} : memref<8x128xf32, #tpu.memory_space<vmem>>, vector<8x128xf32>,
    } else {
    }
    %c8_i32 = arith.constant 8 : i32
    %13 = arith.muli %9, %c8_i32 : i32
    %14 = tpu.assume_multiple %13, 8 : i32
    %c128_i32 = arith.constant 128 : i32
    %15 = arith.muli %arg1, %c128_i32 : i32
    %16 = tpu.assume_multiple %15, 128 : i32
    %17 = arith.index_cast %14 : i32 to index
    %18 = arith.index_cast %16 : i32 to index
    %19 = vector.load %arg6[%17, %18] : memref<16x128xf32, #tpu.memory_space<vmem>>, vector<8x128xf32>
    %c0 = arith.constant 0 : index
    %c0_5 = arith.constant 0 : index
    %20 = vector.load %arg5[%c0, %c0_5] : memref<8x128xf32, #tpu.memory_space<vmem>>, vector<8x128xf32>
    %c0_6 = arith.constant 0 : index
    %c0_7 = arith.constant 0 : index
    %21 = vector.load %arg4[%c0_6, %c0_7] : memref<128x128xf32, #tpu.memory_space<vmem>>, vector<128x128xf32>
    %cst = arith.constant dense<0.000000e+00> : vector<8x128xf32>
    %22 = tpu.matmul %19, %21, %cst {dimension_numbers = #tpu.dot_dimension_numbers<[1], [0], [0], [1], [0, 0, 1, 1], [], []>} : vector<8x128xf32>, vector<128x128xf32>, vector<8x128xf32> -> vector<8x128xf32>
    %23 = arith.addf %20, %22 : vector<8x128xf32>
    %c0_8 = arith.constant 0 : index
    %c0_9 = arith.constant 0 : index
    %24 = vector.load %arg5[%c0_8, %c0_9] : memref<8x128xf32, #tpu.memory_space<vmem>>, vector<8x128xf32>
    tpu.vector_store %arg5[%c0_8, %c0_9], %23 {strides = array<i32>} : memref<8x128xf32, #tpu.memory_space<vmem>>, vector<8x128xf32>,
    return
  }
  func.func @transform_1(%arg0: i32, %arg1: i32, %arg2: memref<8xi32, #tpu.memory_space<smem>>) -> (i32, i32) {
    %c0_i32 = arith.constant 0 : i32
    %c0_i32_0 = arith.constant 0 : i32
    return %arg1, %c0_i32 : i32, i32
  }
  func.func @transform_2(%arg0: i32, %arg1: i32, %arg2: memref<8xi32, #tpu.memory_space<smem>>) -> (i32, i32) {
    %c0_i32 = arith.constant 0 : i32
    %c0_i32_0 = arith.constant 0 : i32
    return %arg0, %c0_i32 : i32, i32
  }
}

</mosaic_0001>

<bundles_post_ra>
// kernel: ppr_exact_forward.1
= control target key start
LH: loop header
LB: loop body
LE: loop exit
PB: predicated region body
PF: predicated region fallthrough
CT: control target
= control target key end

     0   :  { %s913_s15 = smov [#allocation5]   ;;  %s1013_s0 = inlined_call_operand.vmem [shape: s32[8], index: 0, kind: input, shape index: {}]   ;;  %s1014_s1 = inlined_call_operand.vmem [shape: f32[128,128], index: 1, kind: input, shape index: {}]   ;;  %s1015_s2 = inlined_call_operand.vmem [shape: f32[128,128], index: 2, kind: input, shape index: {}]   ;;  %s1016_s3 = inlined_call_operand.hbm [shape: f32[8,128], index: 3, kind: output, shape index: {}]  }
   0x1   :  { %s9_s14 = sshll.u32 %s1013_s0, 4  ;;  %s10_s14 = int_to_ptr.vmem [resolvable:$true] %s9_s14 }
   0x2   :  { %12 = dma.vmem_to_smem %s10_s14, 16, %s913_s15, [#allocation4] }
   0x3   :  { %907 = dma.done.wait [#allocation4], 16 }
   0x4   :  { %908 = vsyncadd [#allocation4], 4294967280 }
   0x5   :  { %15 = sfence }
   0x6   :  { %16 = vsyncpa [#allocation7], 0  ;;  %s35_s16 = sld [smem:[#allocation5]] }
   0xc   :  { %s36_s19 = scalar_lea.vmem %s1014_s1, %s35_s16 }
   0xd   :  { %v51_v0 = vld [vmem:[%s36_s19] sm:$0x1] }
   0xe   :  { %52 = vst [vmem:[#allocation2] sm:$0x1] %v51_v0 }
   0xf   :  { %70 = vsyncadd [#allocation3], 16  ;;  %s851_s20 = sld [smem:[#allocation5 + $0x1]] }
  0x15   :  { %s72_s0 = scalar_lea.vmem %s1014_s1, %s851_s20 }
  0x16   :  { %v88_v1 = vld [vmem:[%s72_s0] sm:$0x1] }
  0x17   :  { %89 = vst [vmem:[#allocation2 + $0x1] sm:$0x1] %v88_v1 }
  0x18   :  { %107 = vsyncadd [#allocation3], 16  ;;  %s852_s23 = sld [smem:[#allocation5 + $0x2]] }
  0x1e   :  { %s109_s26 = scalar_lea.vmem %s1014_s1, %s852_s23 }
  0x1f   :  { %v125_v2 = vld [vmem:[%s109_s26] sm:$0x1] }
  0x20   :  { %126 = vst [vmem:[#allocation2 + $0x2] sm:$0x1] %v125_v2 }
  0x21   :  { %144 = vsyncadd [#allocation3], 16  ;;  %s853_s27 = sld [smem:[#allocation5 + $0x3]] }
  0x27   :  { %s146_s30 = scalar_lea.vmem %s1014_s1, %s853_s27 }
  0x28   :  { %v162_v3 = vld [vmem:[%s146_s30] sm:$0x1] }
  0x29   :  { %163 = vst [vmem:[#allocation2 + $0x3] sm:$0x1] %v162_v3 }
  0x2a   :  { %181 = vsyncadd [#allocation3], 16  ;;  %s854_s4 = sld [smem:[#allocation5 + $0x4]] }
  0x30   :  { %s183_s7 = scalar_lea.vmem %s1014_s1, %s854_s4 }
  0x31   :  { %v199_v4 = vld [vmem:[%s183_s7] sm:$0x1] }
  0x32   :  { %200 = vst [vmem:[#allocation2 + $0x4] sm:$0x1] %v199_v4 }
  0x33   :  { %218 = vsyncadd [#allocation3], 16  ;;  %s855_s8 = sld [smem:[#allocation5 + $0x5]] }
  0x39   :  { %s220_s11 = scalar_lea.vmem %s1014_s1, %s855_s8 }
  0x3a   :  { %v236_v5 = vld [vmem:[%s220_s11] sm:$0x1] }
  0x3b   :  { %237 = vst [vmem:[#allocation2 + $0x5] sm:$0x1] %v236_v5 }
  0x3c   :  { %255 = vsyncadd [#allocation3], 16  ;;  %s856_s12 = sld [smem:[#allocation5 + $0x6]] }
  0x42   :  { %s257_s15 = scalar_lea.vmem %s1014_s1, %s856_s12 }
  0x43   :  { %v273_v6 = vld [vmem:[%s257_s15] sm:$0x1] }
  0x44   :  { %274 = vst [vmem:[#allocation2 + $0x6] sm:$0x1] %v273_v6 }
  0x45   :  { %292 = vsyncadd [#allocation3], 16  ;;  %s857_s16 = sld [smem:[#allocation5 + $0x7]] }
  0x4b   :  { %s294_s19 = scalar_lea.vmem %s1014_s1, %s857_s16 }
  0x4c   :  { %v310_v7 = vld [vmem:[%s294_s19] sm:$0x1] }
  0x4d   :  { %311 = vst [vmem:[#allocation2 + $0x7] sm:$0x1] %v310_v7 }
  0x4e   :  { %329 = vsyncadd [#allocation3], 16 }
  0x4f   :  { %909 = dma.done.wait [#allocation3], 128 }
  0x50   :  { %910 = vsyncadd [#allocation3], 4294967168  ;;  %v691_v8 = vld [vmem:[%s1015_s2 + $0x78] sm:$0xff]  ;;  %v690_v9 = vld [vmem:[%s1015_s2 + $0x70] sm:$0xff]  ;;  %s914_s0 = smov [#allocation6]   ;;  %s721_s25 = sshll.u32 %s1016_s3, 4  ;;  %s722_s25 = int_to_ptr.hbm [resolvable:$true] %s721_s25 }
  0x51   :  { %692 = vmatpush.msra.mxu0 %v691_v8  ;;  %v689_v10 = vld [vmem:[%s1015_s2 + $0x68] sm:$0xff]  ;;  %v688_v11 = vld [vmem:[%s1015_s2 + $0x60] sm:$0xff]  ;;  %v687_v12 = vld [vmem:[%s1015_s2 + $0x58] sm:$0xff]  ;;  %s719_s23 = sshll.u32 %s914_s0, 4  ;;  %s720_s23 = int_to_ptr.vmem [resolvable:$true] %s719_s23 }
  0x52   :  { %v686_v13 = vld [vmem:[%s1015_s2 + $0x50] sm:$0xff]  ;;  %v685_v14 = vld [vmem:[%s1015_s2 + $0x48] sm:$0xff]  ;;  %v684_v15 = vld [vmem:[%s1015_s2 + $0x40] sm:$0xff] }
  0x53   :  { %693 = vmatpush.msra.mxu0 %v690_v9  ;;  %v683_v16 = vld [vmem:[%s1015_s2 + $0x38] sm:$0xff]  ;;  %v682_v17 = vld [vmem:[%s1015_s2 + $0x30] sm:$0xff]  ;;  %v681_v18 = vld [vmem:[%s1015_s2 + $0x28] sm:$0xff] }
  0x54   :  { %v680_v19 = vld [vmem:[%s1015_s2 + $0x20] sm:$0xff]  ;;  %v679_v20 = vld [vmem:[%s1015_s2 + $0x18] sm:$0xff]  ;;  %v678_v21 = vld [vmem:[%s1015_s2 + $0x10] sm:$0xff] }
  0x55   :  { %694 = vmatpush.msra.mxu0 %v689_v10  ;;  %v677_v22 = vld [vmem:[%s1015_s2 + $0x8] sm:$0xff]  ;;  %v676_v23 = vld [vmem:[%s1015_s2] sm:$0xff] }
  0x56   :  { %v674_v24 = vld [vmem:[#allocation2] sm:$0xff] }
  0x57   :  { %695 = vmatpush.msra.mxu0 %v688_v11 }
  0x59   :  { %696 = vmatpush.msra.mxu0 %v687_v12 }
  0x5b   :  { %697 = vmatpush.msra.mxu0 %v686_v13 }
  0x5d   :  { %698 = vmatpush.msra.mxu0 %v685_v14 }
  0x5f   :  { %699 = vmatpush.msra.mxu0 %v684_v15 }
  0x61   :  { %700 = vmatpush.msra.mxu0 %v683_v16 }
  0x63   :  { %701 = vmatpush.msra.mxu0 %v682_v17 }
  0x65   :  { %702 = vmatpush.msra.mxu0 %v681_v18 }
  0x67   :  { %703 = vmatpush.msra.mxu0 %v680_v19 }
  0x69   :  { %704 = vmatpush.msra.mxu0 %v679_v20 }
  0x6b   :  { %705 = vmatpush.msra.mxu0 %v678_v21 }
  0x6d   :  { %706 = vmatpush.msra.mxu0 %v677_v22 }
  0x6f   :  { %707 = vmatpush.msra.mxu0 %v676_v23 }
  0x70   :  { %708 = vmatmul.f32.vlgmr.msra.gmra.mxu0 %v674_v24 }
  0xed   :  { %v709_v25 = vpop.f32.mrf.mxu0 }
  0xee   :  { %713 = vst [vmem:[#allocation6] sm:$0xff] %v709_v25 }
  0xef   :  { %724 = dma.vmem_to_hbm [thread:$0]  %s720_s23, 128, %s722_s25, [#allocation7]  }
  0xf0   :  { %911 = dma.done.wait [#allocation7], 128  }
  0xf1   :  { %912 = vsyncadd [#allocation7], 4294967168 }
  0xf2   :  { %729 = vsyncpa [#allocation7], 1 }
  0xf3   :  { %730 = vsyncmov [#allocation3] }
  0xf6   :  { %s731_s2 = vpop.sfrf %730 }
  0xf7   :  { %p866_p0 = scmp.ne.s32.totalorder %s731_s2, 0 }
  0xf9   :  { %735 = shalt.err (%p866_p0)  }
  0xfa   :  { %737 = vsyncmov [#allocation3 + $0x1] }
  0xfd   :  { %s738_s26 = vpop.sfrf %737 }
  0xfe   :  { %p867_p1 = scmp.ne.s32.totalorder %s738_s26, 0 }
 0x100   :  { %742 = shalt.err (%p867_p1)  }

</bundles_post_ra>
